<compile_context>
chip_gen: v6e
topology: v6e:2x2x1
jax: 0.10.0
libtpu: 0.0.40
codegen_flags: <defaults>
</compile_context>

<pallas_src>
import functools
import math

import jax
import jax.numpy as jnp
from jax.experimental import pallas as pl
from jax.experimental.pallas import tpu as pltpu


def _round_up(x: int, m: int) -> int:
    return (x + m - 1) // m * m


def _choose_token_tile(seq_len: int) -> int:
    # 256/512-row tiles keep the 256x256 MXU (v6e/v7x) fed and map fine onto v5e's 4x128^2;
    # small sequences fall back to a single full-extent block (legal per BlockSpec rules).
    for tile in (512, 256, 128):
        if seq_len >= tile:
            return tile
    return seq_len


# --------------------------------------------------------------------------------------
# Pallas kernel: one (TN, D_pad) token tile -> (TN, H) output tile
#   patch projection (MXU, bf16 x bf16 -> f32) + LayerNorm (f32) + Dense (MXU) + pos-emb
#   + fused cls-token row (row 0 of the first token tile of every batch).
# --------------------------------------------------------------------------------------
def _vit_embed_kernel(tokens_ref,   # (TN, Dp)  bf16   (leading batch dim squeezed)
                      wproj_ref,    # (Dp, H)   bf16
                      bproj_ref,    # (1, H)    f32
                      gamma_ref,    # (1, H)    f32
                      beta_ref,     # (1, H)    f32
                      wdense_ref,   # (H, H)    bf16
                      bdense_ref,   # (1, H)    f32
                      pos_ref,      # (TN, H)   f32   pos_embeddings[:S] tile
                      cls_ref,      # (1, H)    f32   cls_token + pos_embeddings[0]
                      out_ref,      # (TN, H)   f32
                      *, eps: float):
    x = tokens_ref[...]                                               # (TN, Dp) bf16

    # Conv2d(stride=kernel=patch) == matmul over flattened patches; f32 accumulation.
    y = jnp.dot(x, wproj_ref[...],
                preferred_element_type=jnp.float32) + bproj_ref[...]  # (TN, H) f32

    # LayerNorm over hidden dim, all in f32 (biased variance, eps=1e-6, like nn.LayerNorm).
    mean = jnp.mean(y, axis=-1, keepdims=True)
    centered = y - mean
    var = jnp.mean(centered * centered, axis=-1, keepdims=True)
    y_norm = centered * jax.lax.rsqrt(var + eps)
    y_norm = y_norm * gamma_ref[...] + beta_ref[...]

    # Dense(hidden, hidden): bf16 inputs, f32 accumulation on the MXU.
    z = jnp.dot(y_norm.astype(jnp.bfloat16), wdense_ref[...],
                preferred_element_type=jnp.float32) + bdense_ref[...]  # (TN, H) f32

    # Positional embedding for these sequence rows.
    z = z + pos_ref[...]

    # Fused cls token: sequence row 0 (row 0 of token-tile 0 of each batch) is the cls slot.
    row = jax.lax.broadcasted_iota(jnp.int32, (z.shape[0], 1), 0)      # (TN, 1)
    is_cls_row = jnp.logical_and(row == 0, pl.program_id(1) == 0)
    out_ref[...] = jnp.where(is_cls_row, cls_ref[...], z).astype(out_ref.dtype)


def vit_embed_pallas(tokens, w_proj, b_proj, gamma, beta, w_dense, b_dense,
                     pos_seq, cls_row, *, eps=1e-6, token_tile=None):
    """tokens: (B, S, Dp) bf16 (row 0 per batch = cls slot) -> (B, S, H) f32."""
    B, S, Dp = tokens.shape
    H = w_proj.shape[1]
    TN = token_tile if token_tile is not None else _choose_token_tile(S)
    T = pl.cdiv(S, TN)

    kernel = functools.partial(_vit_embed_kernel, eps=eps)

    # VMEM budget (mainly for v7x's 64 MiB): resident bf16 weights + double-buffered
    # token / pos / output tiles + f32 intermediates. Only raise the scoped limit if needed.
    vmem_est = 2 * (TN * Dp * 2          # bf16 token tile
                    + TN * H * 4         # f32 output tile
                    + TN * H * 4         # f32 pos tile
                    + Dp * H * 2         # bf16 W_proj
                    + H * H * 2          # bf16 W_dense
                    + 6 * H * 4)         # small (1, H) vectors
    vmem_est += 4 * TN * H * 4           # f32 intermediates (y, centered, y_norm, z)
    cp_kwargs = dict(dimension_semantics=("parallel", "parallel"))
    if vmem_est > (16 << 20):
        cp_kwargs["vmem_limit_bytes"] = int(min(vmem_est * 2, 96 * 1024 * 1024))

    cost = pl.CostEstimate(
        flops=int(2 * B * S * H * (Dp + H)),
        transcendentals=int(B * S),   # one rsqrt per token row
        bytes_accessed=int(tokens.size * 2 + B * S * H * 4 + Dp * H * 2 + H * H * 2
                           + S * H * 4 + 6 * H * 4),
    )

    return pl.pallas_call(
        kernel,
        out_shape=jax.ShapeDtypeStruct((B, S, H), jnp.float32),
        grid_spec=pltpu.PrefetchScalarGridSpec(
            num_scalar_prefetch=0,
            grid=(B, T),
            in_specs=[
                pl.BlockSpec((None, TN, Dp), lambda b, t: (b, t, 0)),  # token tile (squeezed B)
                pl.BlockSpec((Dp, H), lambda b, t: (0, 0)),            # W_proj (resident)
                pl.BlockSpec((1, H), lambda b, t: (0, 0)),             # b_proj
                pl.BlockSpec((1, H), lambda b, t: (0, 0)),             # LN gamma
                pl.BlockSpec((1, H), lambda b, t: (0, 0)),             # LN beta
                pl.BlockSpec((H, H), lambda b, t: (0, 0)),             # W_dense (resident)
                pl.BlockSpec((1, H), lambda b, t: (0, 0)),             # b_dense
                pl.BlockSpec((TN, H), lambda b, t: (t, 0)),            # pos emb tile
                pl.BlockSpec((1, H), lambda b, t: (0, 0)),             # cls + pos[0]
            ],
            out_specs=pl.BlockSpec((None, TN, H), lambda b, t: (b, t, 0)),
        ),
        compiler_params=pltpu.CompilerParams(**cp_kwargs),
        cost_estimate=cost,
    )(tokens, w_proj, b_proj, gamma, beta, w_dense, b_dense, pos_seq, cls_row)


# --------------------------------------------------------------------------------------
# Glue: positional table, patchify, one-time parameter prep, forward
# --------------------------------------------------------------------------------------
def build_cos_position_embedding(d_model: int, max_len: int = 10000) -> jnp.ndarray:
    """Mirrors ViTEmbeddings.build_cos_position_embedding."""
    den = jnp.exp(-jnp.arange(0, d_model, 2, dtype=jnp.float32)
                  * math.log(float(max_len)) / d_model)
    pos = jnp.arange(0, max_len, dtype=jnp.float32).reshape(max_len, 1)
    pe = jnp.zeros((max_len, d_model), dtype=jnp.float32)
    pe = pe.at[:, 0::2].set(jnp.sin(pos * den))
    pe = pe.at[:, 1::2].set(jnp.cos(pos * den))
    pe_token = jnp.zeros((1, d_model), dtype=jnp.float32)
    return jnp.concatenate([pe_token, pe], axis=0)                    # (max_len + 1, d_model)


def patchify_nchw(x, patch_size):
    """x: (B, C, H, W) NCHW -> (B, N, C*P*P), matching Conv2d(kernel=stride=P) flattening."""
    B, C, Him, Wim = x.shape
    P = patch_size
    Hp, Wp = Him // P, Wim // P
    x = x.reshape(B, C, Hp, P, Wp, P)
    x = jnp.transpose(x, (0, 2, 4, 1, 3, 5))                          # (B, Hp, Wp, C, P, P)
    return x.reshape(B, Hp * Wp, C * P * P)


def init_params(key, num_channels, hidden_size, patch_size):
    D = num_channels * patch_size * patch_size
    H = hidden_size
    k = jax.random.split(key, 6)
    # Deterministic synthetic init (shapes match the PyTorch module's __init__).
    # NOTE: dense_w is used as y = x @ W + b; when importing nn.Linear weights pass weight.T.
    cls_token = jax.random.normal(k[0], (1, 1, H), jnp.float32) * (H ** -0.5)
    conv_w = jax.random.normal(k[1], (H, num_channels, patch_size, patch_size),
                               jnp.float32) * (1.0 / math.sqrt(D))
    conv_b = jax.random.normal(k[2], (H,), jnp.float32) * 0.02
    gamma = jnp.ones((H,), jnp.float32)
    beta = jnp.zeros((H,), jnp.float32)
    dense_w = jax.random.normal(k[3], (H, H), jnp.float32) * (1.0 / math.sqrt(H))
    dense_b = jax.random.normal(k[4], (H,), jnp.float32) * 0.02
    return dict(cls_token=cls_token, conv_w=conv_w, conv_b=conv_b,
                gamma=gamma, beta=beta, dense_w=dense_w, dense_b=dense_b)


def prepare_embedding_params(params, pos_embeddings, num_patches):
    """One-time prep (hoisted out of the per-call path): flatten/transpose the conv weight,
    zero-pad D to a 128 multiple, cast matmul operands to bf16, slice the pos table."""
    conv_w = params["conv_w"]
    H = conv_w.shape[0]
    D = conv_w.shape[1] * conv_w.shape[2] * conv_w.shape[3]
    Dp = _round_up(D, 128)
    S = num_patches + 1

    w_proj = conv_w.reshape(H, D).T                                   # (D, H)
    w_proj = jnp.pad(w_proj, ((0, Dp - D), (0, 0))).astype(jnp.bfloat16)
    w_dense = params["dense_w"].astype(jnp.bfloat16)                  # (H, H)
    b_proj = params["conv_b"].reshape(1, H).astype(jnp.float32)
    b_dense = params["dense_b"].reshape(1, H).astype(jnp.float32)
    gamma = params["gamma"].reshape(1, H).astype(jnp.float32)
    beta = params["beta"].reshape(1, H).astype(jnp.float32)
    pos_seq = pos_embeddings[:S].astype(jnp.float32)                  # (S, H); row 0 = cls slot
    cls_row = (params["cls_token"].reshape(1, H) + pos_seq[0:1]).astype(jnp.float32)
    return dict(w_proj=w_proj, b_proj=b_proj, gamma=gamma, beta=beta,
                w_dense=w_dense, b_dense=b_dense, pos_seq=pos_seq, cls_row=cls_row,
                d_unpadded=D, d_padded=Dp)


def make_tokens(x_nchw, patch_size, d_padded):
    """NCHW image -> (B, 1+N, D_pad) bf16 tokens (row 0 per batch = dummy cls slot)."""
    patches = patchify_nchw(x_nchw, patch_size)                       # (B, N, D)
    D = patches.shape[2]
    return jnp.pad(patches, ((0, 0), (1, 0), (0, d_padded - D))).astype(jnp.bfloat16)


def vit_embeddings_forward(x_nchw, prep, patch_size, token_tile=None):
    """Full ViTEmbeddings.forward. x_nchw: (B, C, H, W) -> (B, 1+N, hidden), f32."""
    tokens = make_tokens(x_nchw, patch_size, prep["d_padded"])
    return vit_embed_pallas(tokens, prep["w_proj"], prep["b_proj"], prep["gamma"],
                            prep["beta"], prep["w_dense"], prep["b_dense"],
                            prep["pos_seq"], prep["cls_row"], token_tile=token_tile)


# --------------------------------------------------------------------------------------
# References for correctness checks
# --------------------------------------------------------------------------------------
def vit_embed_reference_bf16(tokens, prep, eps=1e-6):
    """Pure-JAX reference on exactly the inputs the kernel sees (same bf16 casts)."""
    y = jnp.dot(tokens, prep["w_proj"], preferred_element_type=jnp.float32) + prep["b_proj"]
    mean = y.mean(-1, keepdims=True)
    centered = y - mean
    var = (centered * centered).mean(-1, keepdims=True)
    yn = centered * jax.lax.rsqrt(var + eps) * prep["gamma"] + prep["beta"]
    z = jnp.dot(yn.astype(jnp.bfloat16), prep["w_dense"],
                preferred_element_type=jnp.float32) + prep["b_dense"]
    z = z + prep["pos_seq"][None]
    z = z.at[:, 0, :].set(prep["cls_row"][0])
    return z


def vit_embeddings_reference_f32(x_nchw, params, patch_size, pos_embeddings, eps=1e-6):
    """Module-faithful f32 reference (original PyTorch math)."""
    B = x_nchw.shape[0]
    H = params["conv_w"].shape[0]
    patches = patchify_nchw(x_nchw, patch_size)
    N = patches.shape[1]
    y = patches @ params["conv_w"].reshape(H, -1).T + params["conv_b"]
    mean = y.mean(-1, keepdims=True)
    var = ((y - mean) ** 2).mean(-1, keepdims=True)
    yn = (y - mean) / jnp.sqrt(var + eps) * params["gamma"] + params["beta"]
    z = yn @ params["dense_w"] + params["dense_b"]
    z = z + pos_embeddings[1:N + 1, :]
    cls = params["cls_token"] + pos_embeddings[0]
    cls = jnp.broadcast_to(cls, (B, 1, H))
    return jnp.concatenate([cls, z], axis=1)


if __name__ == "__main__":
    # Small config: image 16x16, patch 4, channels 4, hidden 32 -> 16 patches, seq = 17.
    B, C, IMG, P, HID = 2, 4, 16, 4, 32
    N = (IMG // P) ** 2

    key = jax.random.PRNGKey(0)
    k_x, k_p = jax.random.split(key)
    x = jax.random.normal(k_x, (B, C, IMG, IMG), jnp.float32)         # NCHW like PyTorch
    params = init_params(k_p, C, HID, P)
    pos_embeddings = build_cos_position_embedding(HID)                # (10001, HID)

    prep = prepare_embedding_params(params, pos_embeddings, N)        # one-time prep
    out = vit_embeddings_forward(x, prep, P)
    out = jax.block_until_ready(out)
    assert out.shape == (B, 1 + N, HID), out.shape

    # Tight check: same bf16 inputs, pure-JAX math (catches kernel/BlockSpec bugs).
    tokens = make_tokens(x, P, prep["d_padded"])
    ref_bf16 = vit_embed_reference_bf16(tokens, prep)
    assert jnp.allclose(out, ref_bf16, atol=1e-2, rtol=1e-2), "mismatch vs bf16-matched reference"

    # Loose check: original-module f32 math (tolerance loosened because matmul inputs are bf16).
    ref_f32 = vit_embeddings_reference_f32(x, params, P, pos_embeddings)
    assert jnp.allclose(out, ref_f32, atol=1e-1, rtol=1e-1), "mismatch vs f32 module reference"

    print("KERNEL_OK")
</pallas_src>

<mosaic_0001>
module attributes {stable_mosaic.version = 11 : i64} {
  func.func @_vit_embed_kernel(%arg0: i32, %arg1: i32, %arg2: memref<1x17x128xbf16, #tpu.memory_space<vmem>>, %arg3: memref<128x32xbf16, #tpu.memory_space<vmem>>, %arg4: memref<1x32xf32, #tpu.memory_space<vmem>>, %arg5: memref<1x32xf32, #tpu.memory_space<vmem>>, %arg6: memref<1x32xf32, #tpu.memory_space<vmem>>, %arg7: memref<32x32xbf16, #tpu.memory_space<vmem>>, %arg8: memref<1x32xf32, #tpu.memory_space<vmem>>, %arg9: memref<17x32xf32, #tpu.memory_space<vmem>>, %arg10: memref<1x32xf32, #tpu.memory_space<vmem>>, %arg11: memref<1x17x32xf32, #tpu.memory_space<vmem>>) attributes {dimension_semantics = [#tpu.dimension_semantics<parallel>, #tpu.dimension_semantics<parallel>], iteration_bounds = array<i64: 2, 1>, scalar_prefetch = 0 : i64, scratch_operands = 0 : i64, tpu.core_type = #tpu.core_type<tc>, window_params = [{transform_indices = @transform_0, window_bounds = array<i64: 1, 17, 128>}, {pipeline_mode = #tpu.pipeline_mode<synchronous>, transform_indices = @transform_1, window_bounds = array<i64: 128, 32>}, {pipeline_mode = #tpu.pipeline_mode<synchronous>, transform_indices = @transform_2, window_bounds = array<i64: 1, 32>}, {pipeline_mode = #tpu.pipeline_mode<synchronous>, transform_indices = @transform_3, window_bounds = array<i64: 1, 32>}, {pipeline_mode = #tpu.pipeline_mode<synchronous>, transform_indices = @transform_4, window_bounds = array<i64: 1, 32>}, {pipeline_mode = #tpu.pipeline_mode<synchronous>, transform_indices = @transform_5, window_bounds = array<i64: 32, 32>}, {pipeline_mode = #tpu.pipeline_mode<synchronous>, transform_indices = @transform_6, window_bounds = array<i64: 1, 32>}, {transform_indices = @transform_7, window_bounds = array<i64: 17, 32>}, {pipeline_mode = #tpu.pipeline_mode<synchronous>, transform_indices = @transform_8, window_bounds = array<i64: 1, 32>}, {transform_indices = @transform_9, window_bounds = array<i64: 1, 17, 32>}]} {
    %c0 = arith.constant 0 : index
    %c0_0 = arith.constant 0 : index
    %c0_1 = arith.constant 0 : index
    %0 = vector.load %arg2[%c0, %c0_0, %c0_1] : memref<1x17x128xbf16, #tpu.memory_space<vmem>>, vector<1x17x128xbf16>
    %1 = vector.shape_cast %0 : vector<1x17x128xbf16> to vector<17x128xbf16>
    %c0_2 = arith.constant 0 : index
    %c0_3 = arith.constant 0 : index
    %2 = vector.load %arg3[%c0_2, %c0_3] : memref<128x32xbf16, #tpu.memory_space<vmem>>, vector<128x32xbf16>
    %cst = arith.constant dense<0.000000e+00> : vector<17x32xf32>
    %3 = tpu.matmul %1, %2, %cst {dimension_numbers = #tpu.dot_dimension_numbers<[1], [0], [0], [1], [0, 0, 1, 1], [], []>} : vector<17x128xbf16>, vector<128x32xbf16>, vector<17x32xf32> -> vector<17x32xf32>
    %c0_4 = arith.constant 0 : index
    %c0_5 = arith.constant 0 : index
    %4 = vector.load %arg4[%c0_4, %c0_5] : memref<1x32xf32, #tpu.memory_space<vmem>>, vector<1x32xf32>
    %5 = vector.broadcast %4 : vector<1x32xf32> to vector<17x32xf32>
    %6 = arith.addf %3, %5 : vector<17x32xf32>
    %cst_6 = arith.constant dense<0.000000e+00> : vector<17xf32>
    %7 = vector.multi_reduction <add>, %6, %cst_6 [1] : vector<17x32xf32> to vector<17xf32>
    %8 = vector.shape_cast %7 : vector<17xf32> to vector<17x1xf32>
    %cst_7 = arith.constant 3.200000e+01 : f32
    %9 = vector.broadcast %cst_7 : f32 to vector<17x1xf32>
    %10 = arith.divf %8, %9 : vector<17x1xf32>
    %11 = vector.broadcast %10 : vector<17x1xf32> to vector<17x32xf32>
    %12 = arith.subf %6, %11 : vector<17x32xf32>
    %13 = arith.mulf %12, %12 : vector<17x32xf32>
    %cst_8 = arith.constant dense<0.000000e+00> : vector<17xf32>
    %14 = vector.multi_reduction <add>, %13, %cst_8 [1] : vector<17x32xf32> to vector<17xf32>
    %15 = vector.shape_cast %14 : vector<17xf32> to vector<17x1xf32>
    %cst_9 = arith.constant 3.200000e+01 : f32
    %16 = vector.broadcast %cst_9 : f32 to vector<17x1xf32>
    %17 = arith.divf %15, %16 : vector<17x1xf32>
    %cst_10 = arith.constant 9.99999997E-7 : f32
    %18 = vector.broadcast %cst_10 : f32 to vector<17x1xf32>
    %19 = arith.addf %17, %18 : vector<17x1xf32>
    %20 = math.rsqrt %19 : vector<17x1xf32>
    %21 = vector.broadcast %20 : vector<17x1xf32> to vector<17x32xf32>
    %22 = arith.mulf %12, %21 : vector<17x32xf32>
    %c0_11 = arith.constant 0 : index
    %c0_12 = arith.constant 0 : index
    %23 = vector.load %arg5[%c0_11, %c0_12] : memref<1x32xf32, #tpu.memory_space<vmem>>, vector<1x32xf32>
    %24 = vector.broadcast %23 : vector<1x32xf32> to vector<17x32xf32>
    %25 = arith.mulf %22, %24 : vector<17x32xf32>
    %c0_13 = arith.constant 0 : index
    %c0_14 = arith.constant 0 : index
    %26 = vector.load %arg6[%c0_13, %c0_14] : memref<1x32xf32, #tpu.memory_space<vmem>>, vector<1x32xf32>
    %27 = vector.broadcast %26 : vector<1x32xf32> to vector<17x32xf32>
    %28 = arith.addf %25, %27 : vector<17x32xf32>
    %29 = arith.truncf %28 : vector<17x32xf32> to vector<17x32xbf16>
    %c0_15 = arith.constant 0 : index
    %c0_16 = arith.constant 0 : index
    %30 = vector.load %arg7[%c0_15, %c0_16] : memref<32x32xbf16, #tpu.memory_space<vmem>>, vector<32x32xbf16>
    %cst_17 = arith.constant dense<0.000000e+00> : vector<17x32xf32>
    %31 = tpu.matmul %29, %30, %cst_17 {dimension_numbers = #tpu.dot_dimension_numbers<[1], [0], [0], [1], [0, 0, 1, 1], [], []>} : vector<17x32xbf16>, vector<32x32xbf16>, vector<17x32xf32> -> vector<17x32xf32>
    %c0_18 = arith.constant 0 : index
    %c0_19 = arith.constant 0 : index
    %32 = vector.load %arg8[%c0_18, %c0_19] : memref<1x32xf32, #tpu.memory_space<vmem>>, vector<1x32xf32>
    %33 = vector.broadcast %32 : vector<1x32xf32> to vector<17x32xf32>
    %34 = arith.addf %31, %33 : vector<17x32xf32>
    %c0_20 = arith.constant 0 : index
    %c0_21 = arith.constant 0 : index
    %35 = vector.load %arg9[%c0_20, %c0_21] : memref<17x32xf32, #tpu.memory_space<vmem>>, vector<17x32xf32>
    %36 = arith.addf %34, %35 : vector<17x32xf32>
    %37 = tpu.iota {dimensions = array<i32: 0>} : vector<17x1xi32>
    %c0_i32 = arith.constant 0 : i32
    %38 = vector.broadcast %c0_i32 : i32 to vector<17x1xi32>
    %39 = arith.cmpi eq, %37, %38 : vector<17x1xi32>
    %c0_i32_22 = arith.constant 0 : i32
    %40 = arith.cmpi eq, %arg1, %c0_i32_22 : i32
    %41 = vector.broadcast %40 : i1 to vector<17x1xi1>
    %42 = arith.andi %39, %41 : vector<17x1xi1>
    %c0_23 = arith.constant 0 : index
    %c0_24 = arith.constant 0 : index
    %43 = vector.load %arg10[%c0_23, %c0_24] : memref<1x32xf32, #tpu.memory_space<vmem>>, vector<1x32xf32>
    %44 = vector.shape_cast %42 : vector<17x1xi1> to vector<17x1xi1>
    %45 = vector.broadcast %44 : vector<17x1xi1> to vector<17x32xi1>
    %46 = vector.shape_cast %43 : vector<1x32xf32> to vector<1x32xf32>
    %47 = vector.broadcast %46 : vector<1x32xf32> to vector<17x32xf32>
    %48 = arith.select %45, %47, %36 : vector<17x32xi1>, vector<17x32xf32>
    %c0_25 = arith.constant 0 : index
    %c0_26 = arith.constant 0 : index
    %c0_27 = arith.constant 0 : index
    %49 = vector.load %arg11[%c0_25, %c0_26, %c0_27] : memref<1x17x32xf32, #tpu.memory_space<vmem>>, vector<1x17x32xf32>
    %50 = vector.shape_cast %49 : vector<1x17x32xf32> to vector<17x32xf32>
    %51 = vector.shape_cast %48 : vector<17x32xf32> to vector<1x17x32xf32>
    tpu.vector_store %arg11[%c0_25, %c0_26, %c0_27], %51 {strides = array<i32>} : memref<1x17x32xf32, #tpu.memory_space<vmem>>, vector<1x17x32xf32>,
    return
  }
  func.func @transform_0(%arg0: i32, %arg1: i32) -> (i32, i32, i32) {
    %c0_i32 = arith.constant 0 : i32
    %c0_i32_0 = arith.constant 0 : i32
    return %arg0, %arg1, %c0_i32 : i32, i32, i32
  }
  func.func @transform_1(%arg0: i32, %arg1: i32) -> (i32, i32) {
    %c0_i32 = arith.constant 0 : i32
    %c0_i32_0 = arith.constant 0 : i32
    %c0_i32_1 = arith.constant 0 : i32
    return %c0_i32, %c0_i32_0 : i32, i32
  }
  func.func @transform_2(%arg0: i32, %arg1: i32) -> (i32, i32) {
    %c0_i32 = arith.constant 0 : i32
    %c0_i32_0 = arith.constant 0 : i32
    %c0_i32_1 = arith.constant 0 : i32
    return %c0_i32, %c0_i32_0 : i32, i32
  }
  func.func @transform_3(%arg0: i32, %arg1: i32) -> (i32, i32) {
    %c0_i32 = arith.constant 0 : i32
    %c0_i32_0 = arith.constant 0 : i32
    %c0_i32_1 = arith.constant 0 : i32
    return %c0_i32, %c0_i32_0 : i32, i32
  }
  func.func @transform_4(%arg0: i32, %arg1: i32) -> (i32, i32) {
    %c0_i32 = arith.constant 0 : i32
    %c0_i32_0 = arith.constant 0 : i32
    %c0_i32_1 = arith.constant 0 : i32
    return %c0_i32, %c0_i32_0 : i32, i32
  }
  func.func @transform_5(%arg0: i32, %arg1: i32) -> (i32, i32) {
    %c0_i32 = arith.constant 0 : i32
    %c0_i32_0 = arith.constant 0 : i32
    %c0_i32_1 = arith.constant 0 : i32
    return %c0_i32, %c0_i32_0 : i32, i32
  }
  func.func @transform_6(%arg0: i32, %arg1: i32) -> (i32, i32) {
    %c0_i32 = arith.constant 0 : i32
    %c0_i32_0 = arith.constant 0 : i32
    %c0_i32_1 = arith.constant 0 : i32
    return %c0_i32, %c0_i32_0 : i32, i32
  }
  func.func @transform_7(%arg0: i32, %arg1: i32) -> (i32, i32) {
    %c0_i32 = arith.constant 0 : i32
    %c0_i32_0 = arith.constant 0 : i32
    return %arg1, %c0_i32 : i32, i32
  }
  func.func @transform_8(%arg0: i32, %arg1: i32) -> (i32, i32) {
    %c0_i32 = arith.constant 0 : i32
    %c0_i32_0 = arith.constant 0 : i32
    %c0_i32_1 = arith.constant 0 : i32
    return %c0_i32, %c0_i32_0 : i32, i32
  }
  func.func @transform_9(%arg0: i32, %arg1: i32) -> (i32, i32, i32) {
    %c0_i32 = arith.constant 0 : i32
    %c0_i32_0 = arith.constant 0 : i32
    return %arg0, %arg1, %c0_i32 : i32, i32, i32
  }
}

</mosaic_0001>

<bundles_post_ra>
// kernel: tpu_custom_call.1
= control target key start
LH: loop header
LB: loop body
LE: loop exit
PB: predicated region body
PF: predicated region fallthrough
CT: control target
= control target key end

     0   :  { %s998_s30 = smov 0   ;;  %s1000_s10 = smov 0   ;;  %s1100_s0 = inlined_call_operand.vmem [shape: bf16[2,17,128], index: 0, kind: input, shape index: {}]   ;;  %s1101_s1 = inlined_call_operand.vmem [shape: bf16[128,32], index: 1, kind: input, shape index: {}]   ;;  %s1102_s2 = inlined_call_operand.vmem [shape: f32[1,32], index: 2, kind: input, shape index: {}]   ;;  %s1103_s3 = inlined_call_operand.vmem [shape: f32[1,32], index: 3, kind: input, shape index: {}]   ;;  %s1104_s4 = inlined_call_operand.vmem [shape: f32[1,32], index: 4, kind: input, shape index: {}]   ;;  %s1105_s5 = inlined_call_operand.vmem [shape: bf16[32,32], index: 5, kind: input, shape index: {}]   ;;  %s1106_s6 = inlined_call_operand.vmem [shape: f32[1,32], index: 6, kind: input, shape index: {}]   ;;  %s1107_s7 = inlined_call_operand.vmem [shape: f32[17,32], index: 7, kind: input, shape index: {}]   ;;  %s1108_s8 = inlined_call_operand.vmem [shape: f32[1,32], index: 8, kind: input, shape index: {}]   ;;  %s1109_s9 = inlined_call_operand.vmem [shape: f32[2,17,32], index: 9, kind: output, shape index: {}]  }
   0x1   :  { %s1002_s11 = smov 0  }
   0x2 LB: > { %s31_s12 = sadd.s32 1, %s942_s10  ;;  %p814_p0 = scmp.ge.s32.totalorder %s946_s11, 1  ;;  %s946_s11 = sphi %s1002_s11, %s19_s11   ;;  %s942_s10 = sphi %s1000_s10, %s1111_s10   ;;  %s938_s30 = sphi %s998_s30, %s1110_s30  }
   0x3   : > { %p33_p1 = scmp.ge.s32.totalorder %s31_s12, 2  ;;  %p319_p2 = scmp.lt.s32.totalorder %s946_s11, 3 }
   0x5   : > { %s1113_s12 = smov (%p33_p1, %s31_s12), 0  ;;  %p320_p3 = pnand %p814_p0, %p319_p2 }
   0x6   : > { %p369_p4 = scmp.lt.s32.totalorder (!%p320_p3), %s938_s30, 1 }
   0x7   : > { %323 = sbr.rel (%p320_p3) target bundleno = 762 (0x2fa), region = 56 }
   0xc   : > { %v906_v0 = vld [vmem:[%s1101_s1 + $0x38] sm:$0xff]   ;;  %v907_v1 = vld [vmem:[%s1101_s1 + $0x30] sm:$0xff]   ;;  %s1115_s30 = smov (!%p369_p4, %s938_s30), 1  ;;  %v908_v2 = vld [vmem:[%s1101_s1 + $0x28] sm:$0xff]   ;;  %vm534_vm0 = vcmask 253952   ;;  %vm527_vm1 = vcmask 261120   ;;  %v674_v63 = vlaneseq }
   0xd   : > { %852 = vmatprep.subr.bf16.mxu0 %v906_v0  ;;  %s880_s19 = smul.u32 12, %s1115_s30  ;;  %v909_v3 = vld [vmem:[%s1101_s1 + $0x20] sm:$0xff]   ;;  %v910_v5 = vld [vmem:[%s1101_s1 + $0x18] sm:$0xff]   ;;  %v911_v6 = vld [vmem:[%s1101_s1 + $0x10] sm:$0xff]  }
   0xe   : > { %853 = vmatpush3.bf16.msra.mxu0 %v906_v0  ;;  %v912_v7 = vld [vmem:[%s1101_s1 + $0x8] sm:$0xff]   ;;  %v913_v8 = vld [vmem:[%s1101_s1] sm:$0xff]   ;;  %s881_s26 = smul.u32 24, %s1115_s30 }
   0xf   : > { %854 = vmatprep.subr.bf16.mxu0 %v907_v1  ;;  %s376_s22 = scalar_lea.vmem %s1100_s0, %s880_s19  ;;  %v817_v10 = vld [vmem:[%s1102_s2] ss:$0 sm:$0xff]  ;;  %v916_v36 = vld [vmem:[%s1105_s5 + $0x8] sm:$0xff]  }
  0x10   : > { %v914_v4 = vld [vmem:[%s376_s22] sm:$0xff]   ;;  %v915_v9 = vld [vmem:[%s376_s22 + $0x8] ss:$0 sps:$4 sm:$0x11]   ;;  %872 = vmatprep.subr.bf16.mxu1 %v916_v36  ;;  %s392_s16 = scalar_lea.vmem %s1109_s9, %s881_s26 }
  0x11   : > { %868 = vmatprep.mubr.bf16.mxu0 %v914_v4  ;;  %v917_v37 = vld [vmem:[%s1105_s5] sm:$0xff]   ;;  %873 = vmatpush3.bf16.msra.mxu1 %v916_v36 }
  0x12   : > { %855 = vmatpush3.bf16.msra.mxu0 %v907_v1  ;;  %874 = vmatprep.subr.bf16.mxu1 %v917_v37  ;;  %v828_v49 = vld [vmem:[%s1103_s3] ss:$0 sm:$0xff] }
  0x13   : > { %856 = vmatprep.subr.bf16.mxu0 %v908_v2  ;;  %v829_v55 = vld [vmem:[%s1104_s4] ss:$0 sm:$0xff] }
  0x14   : > { %v830_v0 = vld [vmem:[%s1106_s6] ss:$0 sm:$0xff] }
  0x15   : > { %875 = vmatpush3.bf16.msra.mxu1 %v917_v37 }
  0x16   : > { %857 = vmatpush3.bf16.msra.mxu0 %v908_v2  ;;  %v670_v2 = vld [vmem:[%s1107_s7 + $0x10] sm:$0x1] }
  0x17   : > { %858 = vmatprep.subr.bf16.mxu0 %v909_v3 }
  0x1a   : > { %859 = vmatpush3.bf16.msra.mxu0 %v909_v3  ;;  %v675_v3 = vshrl.u32 %v674_v63, 7 }
  0x1b   : > { %860 = vmatprep.subr.bf16.mxu0 %v910_v5 }
  0x1c   : > { %vm678_vm2 = vcmp.eq.s32.totalorder %v675_v3, 0 }
  0x1e   : > { %861 = vmatpush3.bf16.msra.mxu0 %v910_v5 }
  0x1f   : > { %862 = vmatprep.subr.bf16.mxu0 %v911_v6 }
  0x22   : > { %863 = vmatpush3.bf16.msra.mxu0 %v911_v6  ;;  %v668_v6 = vld [vmem:[%s1107_s7] sm:$0xff] }
  0x23   : > { %864 = vmatprep.subr.bf16.mxu0 %v912_v7 }
  0x26   : > { %865 = vmatpush3.bf16.msra.mxu0 %v912_v7 }
  0x27   : > { %866 = vmatprep.subr.bf16.mxu0 %v913_v8 }
  0x2a   : > { %867 = vmatpush3.bf16.msra.mxu0 %v913_v8 }
  0x2d   : > { %869 = vmatmul.mubr.bf16.vlgmr.msra.gmra.mxu0 %v915_v9  ;;  %v835_v9 = vld [vmem:[%s1108_s8] ss:$0 sm:$0xff] }
  0xed   : > { %v870_v11 = vpop.f32.mrf.mxu0 }
  0xee   : > { %v522_v12 = vadd.f32 %v870_v11, %v817_v10 }
  0xef   : > { %v513_v13 = vpop.f32.mrf.mxu0 }
  0xf0   : > { %v514_v14 = vadd.f32 %v817_v10, %v513_v13  ;;  %v535_v15 = vsel %vm534_vm0, %v522_v12, 0.0  ;;  %v669_v13 = vld [vmem:[%s1107_s7 + $0x8] sm:$0xff] }
  0xf1   : > { %536 = vadd.xlane.f32.xlu1 %v535_v15  ;;  %v871_v16 = vpop.f32.mrf.mxu0 }
  0xf2   : > { %v528_v17 = vsel %vm527_vm1, %v514_v14, 0.0 }
  0xf3   : > { %v516_v18 = vpop.f32.mrf.mxu0  ;;  %529 = vadd.xlane.f32.xlu0 %v528_v17 }
  0xf4   : > { %v517_v19 = vadd.f32 %v817_v10, %v516_v18 }
  0xf6   : > { %v531_v20 = vsel %vm527_vm1, %v517_v19, 0.0 }
  0xf7   : > { %532 = vadd.xlane.f32.xlu0 %v531_v20 }
 0x17a   : > { %v537_v21 = vpop.xlane.xlu1 %536 }
 0x17b   : > { %v541_v22 = vmul.f32 0.03125, %v537_v21 }
 0x17c   : > { %v530_v23 = vpop.xlane.xlu0 %529 }
 0x17d   : > { %v539_v24 = vmul.f32 0.03125, %v530_v23  ;;  %v544_v25 = vsub.f32 %v522_v12, %v541_v22 }
 0x17f   : > { %v542_v26 = vsub.f32 %v514_v14, %v539_v24  ;;  %v547_v32 = vmul.f32 %v544_v25, %v544_v25 }
 0x180   : > { %v533_v27 = vpop.xlane.xlu0 %532 }
 0x181   : > { %v540_v28 = vmul.f32 0.03125, %v533_v27  ;;  %v545_v29 = vmul.f32 %v542_v26, %v542_v26  ;;  %v554_v34 = vsel %vm534_vm0, %v547_v32, 0.0 }
 0x183   : > { %v543_v30 = vsub.f32 %v517_v19, %v540_v28  ;;  %v548_v31 = vsel %vm527_vm1, %v545_v29, 0.0 }
 0x184   : > { %549 = vadd.xlane.f32.xlu1 %v548_v31 }
 0x185   : > { %v546_v33 = vmul.f32 %v543_v30, %v543_v30 }
 0x187   : > { %v551_v35 = vsel %vm527_vm1, %v546_v33, 0.0 }
 0x188   : > { %555 = vadd.xlane.f32.xlu1 %v554_v34  ;;  %552 = vadd.xlane.f32.xlu0 %v551_v35 }
 0x20d   : > { %v550_v38 = vpop.xlane.xlu1 %549 }
 0x20e   : > { %v557_v39 = vmul.f32 0.03125, %v550_v38 }
 0x210   : > { %v560_v40 = vadd.f32 1e-06, %v557_v39 }
 0x211   : > { %v556_v41 = vpop.xlane.xlu1 %555  ;;  %v553_v42 = vpop.xlane.xlu0 %552 }
 0x212   : > { %918 = vrsqrt.f32 %v560_v40  ;;  %v559_v43 = vmul.f32 0.03125, %v556_v41  ;;  %v558_v44 = vmul.f32 0.03125, %v553_v42 }
 0x214   : > { %v562_v45 = vadd.f32 1e-06, %v559_v43  ;;  %v561_v46 = vadd.f32 1e-06, %v558_v44 }
 0x216   : > { %920 = vrsqrt.f32 %v562_v45 }
 0x217   : > { %922 = vrsqrt.f32 %v561_v46 }
 0x21f   : > { %v919_v47 = vpop.eup %918 }
 0x220   : > { %v566_v48 = vmul.f32 %v919_v47, %v542_v26 }
 0x222   : > { %v576_v54 = vmul.f32 %v828_v49, %v566_v48 }
 0x223   : > { %v921_v50 = vpop.eup %920 }
 0x224   : > { %v923_v51 = vpop.eup %922  ;;  %v568_v52 = vmul.f32 %v921_v50, %v544_v25  ;;  %v586_v59 = vadd.f32 %v829_v55, %v576_v54 }
 0x225   : > { %v567_v53 = vmul.f32 %v923_v51, %v543_v30 }
 0x226   : > { %v578_v56 = vmul.f32 %v828_v49, %v568_v52 }
 0x227   : > { %v577_v57 = vmul.f32 %v828_v49, %v567_v53 }
 0x228   : > { %v588_v58 = vadd.f32 %v829_v55, %v578_v56 }
 0x229   : > { %v587_v60 = vadd.f32 %v829_v55, %v577_v57 }
 0x22a   : > { %v590_v61 = vpack.c.bf16 %v588_v58, %v588_v58 }
 0x22b   : > { %v589_v62 = vpack.c.bf16 %v587_v60, %v586_v59 }
 0x22d   : > { %876 = vmatprep.mubr.msk.bf16.mxu1 %vm527_vm1, %v589_v62 }
 0x22e   : > { %877 = vmatmul.mubr.msk.bf16.vlgmr.msra.gmra.mxu1 %vm527_vm1, %v590_v61 }
 0x2ee   : > { %v878_v1 = vpop.f32.mrf.mxu1 }
 0x2ef   : > { %v663_v4 = vadd.f32 %v878_v1, %v830_v0 }
 0x2f0   : > { %v654_v5 = vpop.f32.mrf.mxu1 }
 0x2f1   : > { %v673_v7 = vadd.f32 %v670_v2, %v663_v4  ;;  %v655_v8 = vadd.f32 %v830_v0, %v654_v5 }
 0x2f2   : > { %v879_v10 = vpop.f32.mrf.mxu1 }
 0x2f3   : > { %706 = vst.msk [vmem:[%s392_s16 + $0x10] sm:$0x1] %vm534_vm0, %v673_v7  ;;  %v671_v11 = vadd.f32 %v668_v6, %v655_v8 }
 0x2f4   : > { %v657_v12 = vpop.f32.mrf.mxu1 }
 0x2f5   : > { %v701_v14 = vsel %vm678_vm2, %v835_v9, %v671_v11  ;;  %v658_v15 = vadd.f32 %v830_v0, %v657_v12 }
 0x2f6   : > { %704 = vst.msk [vmem:[%s392_s16] sm:$0xff] %vm527_vm1, %v701_v14 }
 0x2f7   : > { %v672_v16 = vadd.f32 %v669_v13, %v658_v15 }
 0x2f9   : > { %705 = vst.msk [vmem:[%s392_s16 + $0x8] sm:$0xff] %vm527_vm1, %v672_v16 }
 0x2fa PF: > { %s19_s11 = sadd.s32 1, %s946_s11   ;;  %s1110_s30 = smov %s942_s10 }
 0x2fb   : > { %p16_p5 = scmp.ge.s32.totalorder %s19_s11, 4   ;;  %s1111_s10 = smov %s1113_s12 }
 0x2fd   :  { %18 = sbr.rel (!%p16_p5) target bundleno = 2 (0x2), region = 89 }

</bundles_post_ra>
